<compile_context>
chip_gen: v7x
topology: tpu7x:2x2x1
jax: 0.10.0
libtpu: 0.0.40
codegen_flags: <defaults>
</compile_context>

<pallas_src>
import functools

import jax
import jax.numpy as jnp
from jax.experimental import pallas as pl
from jax.experimental.pallas import tpu as pltpu


def _upsample_kernel(x_ref, scale_ref, shift_ref, w_ref, b_ref, o_ref):
    # x_ref:     (1, C_in, TM)      input pixels (channels on sublanes, pixels on lanes)
    # scale_ref: (C_in, 1)          folded BN scale
    # shift_ref: (C_in, 1)          folded BN shift
    # w_ref:     (4*C_out, C_in)    transposed-conv taps stacked k-major, k = kh*2 + kw
    # b_ref:     (4*C_out, 1)       conv bias (tiled 4x to match the stacked taps)
    # o_ref:     (1, 4*C_out, TM)   de-interleaved output (lane-dense slab, single store)
    x = x_ref[0].astype(jnp.float32)                                   # (C_in, TM)
    xr = jnp.maximum(x * scale_ref[...] + shift_ref[...], 0.0)         # BN + ReLU
    y = jnp.dot(w_ref[...], xr, preferred_element_type=jnp.float32)    # (4*C_out, TM)
    o_ref[0] = (y + b_ref[...]).astype(o_ref.dtype)


def _pick_tile(hw, max_tile=8192):
    """Largest legal lane tile for the flattened spatial axis (no padding if possible)."""
    if hw <= max_tile:
        return hw, hw                      # single full-width tile, no padding
    for t in (8192, 4096, 2048, 1024, 512, 256, 128):
        if hw % t == 0:
            return t, hw
    t = 512                                # rare fallback: hw not a multiple of 128
    return t, ((hw + t - 1) // t) * t


@functools.partial(jax.jit, static_argnames=("eps",))
def upsample_layer_forward(x_nchw, skip, bn_gamma, bn_beta, bn_mean, bn_var,
                           w, b, eps=1e-5):
    """UpsampleLayer.forward.

    x_nchw: (N, C_in, H, W)
    skip:   (N, C_skip, 2H, 2W)
    w:      (C_in, C_out, 2, 2)   (PyTorch ConvTranspose2d weight layout)
    b:      (C_out,)
    returns (N, C_out + C_skip, 2H, 2W)
    """
    N, C_in, H, W = x_nchw.shape
    C_out = w.shape[1]
    HW = H * W

    # ---- fold BatchNorm (inference) into per-channel scale/shift ------------
    scale = (bn_gamma / jnp.sqrt(bn_var + eps)).astype(jnp.float32)
    shift = (bn_beta - bn_mean * scale).astype(jnp.float32)
    scale2 = scale.reshape(C_in, 1)
    shift2 = shift.reshape(C_in, 1)

    # 2x2 transposed-conv weight -> one stacked (4*C_out, C_in) matrix, k = kh*2 + kw.
    w_all = jnp.transpose(w, (2, 3, 1, 0)).reshape(4 * C_out, C_in).astype(jnp.float32)
    b_all = jnp.tile(b.reshape(1, C_out), (4, 1)).reshape(4 * C_out, 1).astype(jnp.float32)

    # ---- flatten spatial: NCHW -> (N, C_in, H*W); pure reshape, no transpose -
    x3 = x_nchw.reshape(N, C_in, HW)
    tile, hw_pad = _pick_tile(HW)
    if hw_pad != HW:                       # rare fallback only
        x3 = jnp.pad(x3, ((0, 0), (0, 0), (0, hw_pad - HW)))

    grid = (N, hw_pad // tile)

    out = pl.pallas_call(
        _upsample_kernel,
        out_shape=jax.ShapeDtypeStruct((N, 4 * C_out, hw_pad), x_nchw.dtype),
        grid_spec=pltpu.PrefetchScalarGridSpec(
            num_scalar_prefetch=0,
            grid=grid,
            in_specs=[
                pl.BlockSpec((1, C_in, tile), lambda n, t: (n, 0, t)),
                pl.BlockSpec((C_in, 1), lambda n, t: (0, 0)),
                pl.BlockSpec((C_in, 1), lambda n, t: (0, 0)),
                pl.BlockSpec((4 * C_out, C_in), lambda n, t: (0, 0)),
                pl.BlockSpec((4 * C_out, 1), lambda n, t: (0, 0)),
            ],
            out_specs=pl.BlockSpec((1, 4 * C_out, tile), lambda n, t: (n, 0, t)),
        ),
        compiler_params=pltpu.CompilerParams(
            dimension_semantics=("parallel", "parallel"),
            vmem_limit_bytes=64 * 1024 * 1024,   # tiles are small; plenty of headroom
        ),
    )(x3, scale2, shift2, w_all, b_all)

    if hw_pad != HW:
        out = out[..., :HW]

    # ---- stride-2 spatial interleave (pure layout op, done once by XLA) -----
    # out[n, (kh*2+kw)*C_out + co, i*W + j]  ->  up[n, co, 2i+kh, 2j+kw]
    up = out.reshape(N, 2, 2, C_out, H, W)
    up = jnp.transpose(up, (0, 3, 4, 1, 5, 2)).reshape(N, C_out, 2 * H, 2 * W)

    # ---- concat with skip connection along channels --------------------------
    return jnp.concatenate([up, skip.astype(up.dtype)], axis=1)


def _reference(x, skip, gamma, beta, mean, var, w, b, eps=1e-5):
    # Pure-JAX reference: BN(eval) -> ReLU -> ConvTranspose2d(k=2, s=2) -> concat.
    scale = gamma / jnp.sqrt(var + eps)
    shift = beta - mean * scale
    xr = jnp.maximum(x * scale[None, :, None, None] + shift[None, :, None, None], 0.0)
    # out[n, d, 2i+kh, 2j+kw] = sum_c xr[n, c, i, j] * w[c, d, kh, kw] + b[d]
    t = jnp.einsum("ncij,cdkl->ndikjl", xr, w)
    N, _, H, W = x.shape
    C_out = w.shape[1]
    up = t.reshape(N, C_out, 2 * H, 2 * W) + b[None, :, None, None]
    return jnp.concatenate([up, skip], axis=1)


if __name__ == "__main__":
    key = jax.random.PRNGKey(0)
    N, C_in, C_out, H, W = 2, 4, 8, 16, 16
    C_skip = C_out

    ks = jax.random.split(key, 8)
    x = jax.random.normal(ks[0], (N, C_in, H, W), dtype=jnp.float32)
    skip = jax.random.normal(ks[1], (N, C_skip, 2 * H, 2 * W), dtype=jnp.float32)
    # BatchNorm parameters (deterministic, non-trivial).
    bn_gamma = 1.0 + 0.1 * jax.random.normal(ks[2], (C_in,), dtype=jnp.float32)
    bn_beta = 0.1 * jax.random.normal(ks[3], (C_in,), dtype=jnp.float32)
    bn_mean = 0.05 * jax.random.normal(ks[4], (C_in,), dtype=jnp.float32)
    bn_var = 1.0 + 0.1 * jax.random.uniform(ks[5], (C_in,), dtype=jnp.float32)
    # ConvTranspose2d weight/bias; PyTorch layout (in_channels, out_channels, kH, kW).
    w = 0.1 * jax.random.normal(ks[6], (C_in, C_out, 2, 2), dtype=jnp.float32)
    b = 0.1 * jax.random.normal(ks[7], (C_out,), dtype=jnp.float32)

    out = upsample_layer_forward(x, skip, bn_gamma, bn_beta, bn_mean, bn_var, w, b)
    out = jax.block_until_ready(out)

    ref = _reference(x, skip, bn_gamma, bn_beta, bn_mean, bn_var, w, b)
    assert out.shape == (N, C_out + C_skip, 2 * H, 2 * W), out.shape
    assert jnp.allclose(out, ref, atol=1e-4, rtol=1e-4)

    print("KERNEL_OK")
</pallas_src>

<mosaic_0001>
module attributes {stable_mosaic.version = 11 : i64} {
  func.func @_upsample_kernel(%arg0: i32, %arg1: i32, %arg2: memref<1x4x256xf32, #tpu.memory_space<vmem>>, %arg3: memref<4x1xf32, #tpu.memory_space<vmem>>, %arg4: memref<4x1xf32, #tpu.memory_space<vmem>>, %arg5: memref<32x4xf32, #tpu.memory_space<vmem>>, %arg6: memref<32x1xf32, #tpu.memory_space<vmem>>, %arg7: memref<1x32x256xf32, #tpu.memory_space<vmem>>) attributes {dimension_semantics = [#tpu.dimension_semantics<parallel>, #tpu.dimension_semantics<parallel>], iteration_bounds = array<i64: 2, 1>, scalar_prefetch = 0 : i64, scratch_operands = 0 : i64, tpu.core_type = #tpu.core_type<tc>, window_params = [{transform_indices = @transform_0, window_bounds = array<i64: 1, 4, 256>}, {pipeline_mode = #tpu.pipeline_mode<synchronous>, transform_indices = @transform_1, window_bounds = array<i64: 4, 1>}, {pipeline_mode = #tpu.pipeline_mode<synchronous>, transform_indices = @transform_2, window_bounds = array<i64: 4, 1>}, {pipeline_mode = #tpu.pipeline_mode<synchronous>, transform_indices = @transform_3, window_bounds = array<i64: 32, 4>}, {pipeline_mode = #tpu.pipeline_mode<synchronous>, transform_indices = @transform_4, window_bounds = array<i64: 32, 1>}, {transform_indices = @transform_5, window_bounds = array<i64: 1, 32, 256>}]} {
    %c0 = arith.constant 0 : index
    %c0_0 = arith.constant 0 : index
    %c0_1 = arith.constant 0 : index
    %0 = vector.load %arg2[%c0, %c0_0, %c0_1] : memref<1x4x256xf32, #tpu.memory_space<vmem>>, vector<1x4x256xf32>
    %1 = vector.shape_cast %0 : vector<1x4x256xf32> to vector<4x256xf32>
    %c0_2 = arith.constant 0 : index
    %c0_3 = arith.constant 0 : index
    %2 = vector.load %arg3[%c0_2, %c0_3] : memref<4x1xf32, #tpu.memory_space<vmem>>, vector<4x1xf32>
    %3 = vector.broadcast %2 : vector<4x1xf32> to vector<4x256xf32>
    %4 = arith.mulf %1, %3 : vector<4x256xf32>
    %c0_4 = arith.constant 0 : index
    %c0_5 = arith.constant 0 : index
    %5 = vector.load %arg4[%c0_4, %c0_5] : memref<4x1xf32, #tpu.memory_space<vmem>>, vector<4x1xf32>
    %6 = vector.broadcast %5 : vector<4x1xf32> to vector<4x256xf32>
    %7 = arith.addf %4, %6 : vector<4x256xf32>
    %cst = arith.constant 0.000000e+00 : f32
    %8 = vector.broadcast %cst : f32 to vector<4x256xf32>
    %9 = arith.maximumf %7, %8 : vector<4x256xf32>
    %c0_6 = arith.constant 0 : index
    %c0_7 = arith.constant 0 : index
    %10 = vector.load %arg5[%c0_6, %c0_7] : memref<32x4xf32, #tpu.memory_space<vmem>>, vector<32x4xf32>
    %cst_8 = arith.constant dense<0.000000e+00> : vector<32x256xf32>
    %11 = tpu.matmul %10, %9, %cst_8 {dimension_numbers = #tpu.dot_dimension_numbers<[1], [0], [0], [1], [0, 0, 1, 1], [], []>} : vector<32x4xf32>, vector<4x256xf32>, vector<32x256xf32> -> vector<32x256xf32>
    %c0_9 = arith.constant 0 : index
    %c0_10 = arith.constant 0 : index
    %12 = vector.load %arg6[%c0_9, %c0_10] : memref<32x1xf32, #tpu.memory_space<vmem>>, vector<32x1xf32>
    %13 = vector.broadcast %12 : vector<32x1xf32> to vector<32x256xf32>
    %14 = arith.addf %11, %13 : vector<32x256xf32>
    %c0_11 = arith.constant 0 : index
    %c0_12 = arith.constant 0 : index
    %c0_13 = arith.constant 0 : index
    %15 = vector.load %arg7[%c0_11, %c0_12, %c0_13] : memref<1x32x256xf32, #tpu.memory_space<vmem>>, vector<1x32x256xf32>
    %16 = vector.shape_cast %15 : vector<1x32x256xf32> to vector<32x256xf32>
    %17 = vector.shape_cast %14 : vector<32x256xf32> to vector<1x32x256xf32>
    tpu.vector_store %arg7[%c0_11, %c0_12, %c0_13], %17 {strides = array<i32>} : memref<1x32x256xf32, #tpu.memory_space<vmem>>, vector<1x32x256xf32>,
    return
  }
  func.func @transform_0(%arg0: i32, %arg1: i32) -> (i32, i32, i32) {
    %c0_i32 = arith.constant 0 : i32
    %c0_i32_0 = arith.constant 0 : i32
    return %arg0, %c0_i32, %arg1 : i32, i32, i32
  }
  func.func @transform_1(%arg0: i32, %arg1: i32) -> (i32, i32) {
    %c0_i32 = arith.constant 0 : i32
    %c0_i32_0 = arith.constant 0 : i32
    %c0_i32_1 = arith.constant 0 : i32
    return %c0_i32, %c0_i32_0 : i32, i32
  }
  func.func @transform_2(%arg0: i32, %arg1: i32) -> (i32, i32) {
    %c0_i32 = arith.constant 0 : i32
    %c0_i32_0 = arith.constant 0 : i32
    %c0_i32_1 = arith.constant 0 : i32
    return %c0_i32, %c0_i32_0 : i32, i32
  }
  func.func @transform_3(%arg0: i32, %arg1: i32) -> (i32, i32) {
    %c0_i32 = arith.constant 0 : i32
    %c0_i32_0 = arith.constant 0 : i32
    %c0_i32_1 = arith.constant 0 : i32
    return %c0_i32, %c0_i32_0 : i32, i32
  }
  func.func @transform_4(%arg0: i32, %arg1: i32) -> (i32, i32) {
    %c0_i32 = arith.constant 0 : i32
    %c0_i32_0 = arith.constant 0 : i32
    %c0_i32_1 = arith.constant 0 : i32
    return %c0_i32, %c0_i32_0 : i32, i32
  }
  func.func @transform_5(%arg0: i32, %arg1: i32) -> (i32, i32, i32) {
    %c0_i32 = arith.constant 0 : i32
    %c0_i32_0 = arith.constant 0 : i32
    return %arg0, %c0_i32, %arg1 : i32, i32, i32
  }
}

</mosaic_0001>

<bundles_post_ra>
// kernel: tile.6
= control target key start
LH: loop header
LB: loop body
LE: loop exit
PB: predicated region body
PF: predicated region fallthrough
CT: control target
= control target key end

     0   :  { %s22_s0 = inlined_call_operand.vmem [shape: f32[8], index: 0, kind: input, shape index: {}]   ;;  %s23_s1 = inlined_call_operand.vmem [shape: f32[4,1,1,8], index: 1, kind: output, shape index: {}]  }
   0x1   :  { %v4_v0 = vld [vmem:[%s22_s0] ss:$0 sm:$0xff] }
   0x2   :  { %5 = vst [vmem:[%s23_s1] sm:$0xf] %v4_v0 }

// kernel: tile.0
= control target key start
LH: loop header
LB: loop body
LE: loop exit
PB: predicated region body
PF: predicated region fallthrough
CT: control target
= control target key end

     0   :  { %s135_s0 = inlined_call_operand.vmem [shape: f32[4,1,1,8], index: 0, kind: input, shape index: {}]   ;;  %s136_s1 = inlined_call_operand.hbm [shape: f32[32,1], index: 1, kind: output, shape index: {}]  }
   0x1   :  { %v5_v0 = vld [vmem:[%s135_s0] sm:$0xf] }
   0x2   :  { %6 = vst [vmem:[#allocation2] sm:$0xf] %v5_v0 }
   0x3   :  { %2 = vsyncpa [#allocation1], 0  ;;  %s94_s0 = smov 127   ;;  %s95_s8 = smov 125   ;;  %vm8_vm0 = vcmask 7168  }
   0x4   :  { %s96_s9 = smov 126   ;;  %s97_s10 = smov 124  }
   0x5   :  { %s98_s11 = smov 123   ;;  %s99_s12 = smov 122  }
   0x6   :  { %s100_s13 = smov 121   ;;  %s101_s14 = smov [#allocation0]  }
   0x7   :  { %s56_s15 = sshll.u32 %s101_s14, 4  ;;  %s57_s15 = int_to_ptr.vmem [resolvable:$true] %s56_s15 }
   0x8   :  { %s70_s16 = scalar_lea.vmem %s57_s15, 512  ;;  %p75_p1 = scmp.lt.s32.totalorder %s57_s15, %s57_s15 }
   0x9   :  { %v10_v1 = vld [vmem:[#allocation2] sm:$0xf]   ;;  %p71_p0 = scmp.ne.s32.totalorder %s57_s15, %s70_s16  ;;  %p76_p2 = scmp.lt.s32.totalorder %s70_s16, %s70_s16 }
   0xa   :  { %v22_v2 = vld [vmem:[#allocation2] sm:$0xf]   ;;  %11 = vrot.lane.b32.xlu0 %v10_v1, %s94_s0 }
   0xb   :  { %23 = vrot.lane.b32.xlu1 %v22_v2, %s95_s8  ;;  %v16_v3 = vld [vmem:[#allocation2] sm:$0xf]   ;;  %p77_p3 = por %p76_p2, %p75_p1 }
   0xc   :  { %v28_v4 = vld [vmem:[#allocation2] sm:$0xf]  }
   0xd   :  { %v7_v5 = vld [vmem:[#allocation2] sm:$0xf]   ;;  %p78_p4 = pnand %p77_p3, %p71_p0 }
   0xe   :  { %9 = vst.msk [vmem:[#allocation0] ss:$8 sm:$0xf] %vm8_vm0, %v7_v5   ;;  %17 = vrot.lane.b32.xlu0 %v16_v3, %s96_s9  ;;  %v34_v6 = vld [vmem:[#allocation2] sm:$0xf]  }
   0xf   :  { %29 = vrot.lane.b32.xlu1 %v28_v4, %s97_s10  ;;  %v40_v7 = vld [vmem:[#allocation2] sm:$0xf]  }
  0x10   :  { %v46_v8 = vld [vmem:[#allocation2] sm:$0xf]  }
  0x12   :  { %35 = vrot.lane.b32.xlu0 %v34_v6, %s98_s11 }
  0x13   :  { %41 = vrot.lane.b32.xlu1 %v40_v7, %s99_s12 }
  0x16   :  { %47 = vrot.lane.b32.xlu0 %v46_v8, %s100_s13 }
  0x7c   :  { %v12_v9 = vpop.permute.xlu0 %11  }
  0x7d   :  { %v24_v10 = vpop.permute.xlu1 %23   ;;  %15 = vst.msk [vmem:[#allocation0 + $0x1] ss:$8 sm:$0xf] %vm8_vm0, %v12_v9  }
  0x7e   :  { %27 = vst.msk [vmem:[#allocation0 + $0x3] ss:$8 sm:$0xf] %vm8_vm0, %v24_v10  }
  0x80   :  { %v18_v11 = vpop.permute.xlu0 %17  }
  0x81   :  { %v30_v12 = vpop.permute.xlu1 %29   ;;  %21 = vst.msk [vmem:[#allocation0 + $0x2] ss:$8 sm:$0xf] %vm8_vm0, %v18_v11  }
  0x82   :  { %33 = vst.msk [vmem:[#allocation0 + $0x4] ss:$8 sm:$0xf] %vm8_vm0, %v30_v12  }
  0x84   :  { %v36_v13 = vpop.permute.xlu0 %35  }
  0x85   :  { %v42_v14 = vpop.permute.xlu1 %41   ;;  %39 = vst.msk [vmem:[#allocation0 + $0x5] ss:$8 sm:$0xf] %vm8_vm0, %v36_v13  }
  0x86   :  { %45 = vst.msk [vmem:[#allocation0 + $0x6] ss:$8 sm:$0xf] %vm8_vm0, %v42_v14  }
  0x88   :  { %v48_v15 = vpop.permute.xlu0 %47  }
  0x89   :  { %51 = vst.msk [vmem:[#allocation0 + $0x7] ss:$8 sm:$0xf] %vm8_vm0, %v48_v15  }
  0x8a   :  { %81 = shalt.err (!%p78_p4)
}
  0x8b   :  { %s82_s19 = scalar_lea.hbm %s136_s1, 512 }
  0x8c   :  { %p83_p5 = scmp.ne.s32.totalorder %s136_s1, %s82_s19  ;;  %p86_p6 = scmp.lt.u32.totalorder %s82_s19, %s136_s1 }
  0x8e   :  { %p88_p7 = pnand %p86_p6, %p83_p5 }
  0x90   :  { %91 = shalt.err (!%p88_p7)
}
  0x91   :  { %59 = dma.vmem_to_hbm [thread:$0]  %s57_s15, 512, %s136_s1, [#allocation1]  }
  0x92   :  { %92 = dma.done.wait [#allocation1], 512  }
  0x93   :  { %93 = vsyncadd [#allocation1], 4294966784 }
  0x94   :  { %61 = vsyncpa [#allocation1], 1 }

// kernel: upsample_layer_forward.1
= control target key start
LH: loop header
LB: loop body
LE: loop exit
PB: predicated region body
PF: predicated region fallthrough
CT: control target
= control target key end

     0   :  { %10 = vsyncpa [#allocation3], 0  ;;  %s1353_s0 = inlined_call_operand.hbm [shape: f32[2,4,256], index: 0, kind: input, shape index: {}]   ;;  %s1354_s1 = inlined_call_operand.hbm [shape: f32[4,1], index: 1, kind: input, shape index: {}]   ;;  %s1355_s2 = inlined_call_operand.hbm [shape: f32[4,1], index: 2, kind: input, shape index: {}]   ;;  %s1356_s3 = inlined_call_operand.hbm [shape: f32[32,4], index: 3, kind: input, shape index: {}]   ;;  %s1357_s4 = inlined_call_operand.hbm [shape: f32[32,1], index: 4, kind: input, shape index: {}]   ;;  %s1358_s5 = inlined_call_operand.hbm [shape: f32[2,32,256], index: 5, kind: output, shape index: {}]  }
   0x1   :  { %12 = vsyncpa [#allocation3 + $0x1], 0 }
   0x2   :  { %13 = vsyncpa [#allocation6], 0 }
   0x3   :  { %14 = vsyncpa [#allocation9], 0 }
   0x4   :  { %15 = vsyncpa [#allocation4], 0 }
   0x5   :  { %17 = vsyncpa [#allocation4 + $0x1], 0  ;;  %s1053_s18 = smov 0   ;;  %s1055_s19 = smov 0  }
   0x6   :  { %s1057_s20 = smov 0   ;;  %s1059_s21 = smov 0  }
   0x7   :  { %s1061_s22 = smov 0   ;;  %s1063_s23 = smov 0  }
   0x8 LB: > { %s631_s24 = sadd.s32 4294967295, %s1008_s23   ;;  %p633_p0 = scmp.ge.s32.totalorder %s1008_s23, 1  ;;  %s1008_s23 = sphi %s1063_s23, %s23_s23   ;;  %s1004_s22 = sphi %s1061_s22, %s1382_s22   ;;  %s1000_s21 = sphi %s1059_s21, %s1381_s21   ;;  %s996_s20 = sphi %s1057_s20, %s1380_s20   ;;  %s992_s19 = sphi %s1055_s19, %s1379_s19   ;;  %s988_s18 = sphi %s1053_s18, %s1378_s18  }
   0x9   : > { %p1087_p1 = scmp.eq.s32.totalorder %s631_s24, 0  ;;  %p180_p2 = scmp.lt.s32.totalorder %s1008_s23, 3 }
   0xa   : > { %s1010_s27 = smov [#allocation5]   ;;  %s1011_s29 = smov [#allocation8]  }
   0xb   : > { %s1363_s25 = scalar_select %p1087_p1, 1, 0 }
   0xc   : > { %p1092_p3 = pnand %p633_p0, %p180_p2  ;;  %s193_s28 = sshll.u32 %s1010_s27, 4  ;;  %s194_s28 = int_to_ptr.vmem [resolvable:$true] %s193_s28 }
   0xd   : > { %s214_s30 = sshll.u32 %s1011_s29, 4  ;;  %s1012_s7 = smov [#allocation7]   ;;  %s1105_s30 = int_to_ptr.vmem [resolvable:$true] %s214_s30 }
   0xe   : > { %s1364_s26 = scalar_select %p1092_p3, 1, 0 }
   0xf   : > { %p684_p5 = pneg %p1092_p3  ;;  %s1107_s8 = sshll.u32 %s1012_s7, 4  ;;  %s205_s8 = int_to_ptr.vmem [resolvable:$true] %s1107_s8 }
  0x10   : > { %s776_s11 = scalar_lea.hbm %s1354_s1, 64 }
  0x11   : > { %p1101_p6 = pnand %p684_p5, %p1087_p1  ;;  %p777_p7 = scmp.ne.s32.totalorder %s1354_s1, %s776_s11 }
  0x12   : > { %p783_p11 = scmp.lt.u32.totalorder %s776_s11, %s1354_s1 }
  0x13   : > { %p1117_p8 = pneg %p1101_p6 }
  0x15   : > { %p779_p9 = pnand %p1117_p8, %p777_p7 }
  0x17   : > { %p780_p10 = pneg %p779_p9 }
  0x19   : > { %p785_p12 = pnand %p783_p11, %p780_p10 }
  0x1b   : > { %788 = shalt.err (!%p785_p12)
}
  0x1c   : > { %s789_s17 = scalar_lea.vmem %s194_s28, 64  ;;  %p797_p5 = scmp.lt.s32.totalorder %s194_s28, %s194_s28 }
  0x1d   : > { %p790_p13 = scmp.ne.s32.totalorder %s194_s28, %s789_s17  ;;  %p798_p4 = scmp.lt.s32.totalorder %s789_s17, %s789_s17 }
  0x1f   : > { %p792_p0 = pnand %p790_p13, %p1117_p8  ;;  %p799_p3 = por %p798_p4, %p797_p5 }
  0x21   : > { %p793_p2 = pneg %p792_p0 }
  0x23   : > { %p800_p1 = pnand %p799_p3, %p793_p2 }
  0x25   : > { %803 = shalt.err (!%p800_p1)
}
  0x26   : > { %687 = dma.hbm_to_vmem [thread:$0]  (!%p1101_p6), %s1354_s1, 64, %s194_s28, [#allocation6]  }
  0x27   : > { %s804_s10 = scalar_lea.hbm %s1356_s3, 512 }
  0x28   : > { %p805_p7 = scmp.ne.s32.totalorder %s1356_s3, %s804_s10  ;;  %p811_p1 = scmp.lt.u32.totalorder %s804_s10, %s1356_s3 }
  0x2a   : > { %p807_p9 = pnand %p805_p7, %p1117_p8 }
  0x2c   : > { %p808_p4 = pneg %p807_p9 }
  0x2e   : > { %p813_p3 = pnand %p811_p1, %p808_p4 }
  0x30   : > { %816 = shalt.err (!%p813_p3)
}
  0x31   : > { %s817_s28 = scalar_lea.vmem %s1105_s30, 512  ;;  %p825_p13 = scmp.lt.s32.totalorder %s1105_s30, %s1105_s30 }
  0x32   : > { %p818_p10 = scmp.ne.s32.totalorder %s1105_s30, %s817_s28  ;;  %p826_p0 = scmp.lt.s32.totalorder %s817_s28, %s817_s28 }
  0x34   : > { %p820_p11 = pnand %p818_p10, %p1117_p8  ;;  %p827_p2 = por %p826_p0, %p825_p13 }
  0x36   : > { %p821_p12 = pneg %p820_p11 }
  0x38   : > { %p828_p5 = pnand %p827_p2, %p821_p12 }
  0x3a   : > { %831 = shalt.err (!%p828_p5)
}
  0x3b   : > { %s1013_s16 = smov 128   ;;  %s1014_s17 = smov 8  }
  0x3c   : > { %693 = dma.hbm_to_vmem [thread:$0]  (!%p1101_p6), %s1356_s3, 512, %s1105_s30, [#allocation9], %s1013_s16, %s1013_s16, %s1014_s17  }
  0x3d   : > { %s832_s10 = scalar_lea.hbm %s1355_s2, 64 }
  0x3e   : > { %p833_p7 = scmp.ne.s32.totalorder %s1355_s2, %s832_s10  ;;  %p839_p1 = scmp.lt.u32.totalorder %s832_s10, %s1355_s2 }
  0x40   : > { %p835_p9 = pnand %p833_p7, %p1117_p8 }
  0x42   : > { %p836_p4 = pneg %p835_p9 }
  0x44   : > { %p841_p3 = pnand %p839_p1, %p836_p4 }
  0x46   : > { %844 = shalt.err (!%p841_p3)
}
  0x47   : > { %s845_s28 = scalar_lea.vmem %s205_s8, 64  ;;  %p853_p13 = scmp.lt.s32.totalorder %s205_s8, %s205_s8 }
  0x48   : > { %p846_p10 = scmp.ne.s32.totalorder %s205_s8, %s845_s28  ;;  %p854_p0 = scmp.lt.s32.totalorder %s845_s28, %s845_s28 }
  0x4a   : > { %p848_p11 = pnand %p846_p10, %p1117_p8  ;;  %p855_p2 = por %p854_p0, %p853_p13 }
  0x4c   : > { %p849_p12 = pneg %p848_p11 }
  0x4e   : > { %p856_p5 = pnand %p855_p2, %p849_p12 }
  0x50   : > { %859 = shalt.err (!%p856_p5)
}
  0x51   : > { %690 = dma.hbm_to_vmem [thread:$0]  (!%p1101_p6), %s1355_s2, 64, %s205_s8, [#allocation6]  }
  0x52   : > { %s1015_s29 = smov [#allocation10]   ;;  %s860_s11 = scalar_lea.hbm %s1357_s4, 512 }
  0x53   : > { %s227_s7 = sshll.u32 %s1015_s29, 4  ;;  %p861_p7 = scmp.ne.s32.totalorder %s1357_s4, %s860_s11  ;;  %s228_s7 = int_to_ptr.vmem [resolvable:$true] %s227_s7 }
  0x54   : > { %p867_p1 = scmp.lt.u32.totalorder %s860_s11, %s1357_s4 }
  0x55   : > { %p863_p9 = pnand %p861_p7, %p1117_p8 }
  0x57   : > { %p864_p4 = pneg %p863_p9 }
  0x59   : > { %p869_p3 = pnand %p867_p1, %p864_p4 }
  0x5b   : > { %872 = shalt.err (!%p869_p3)
}
  0x5c   : > { %s873_s8 = scalar_lea.vmem %s228_s7, 512  ;;  %p881_p13 = scmp.lt.s32.totalorder %s228_s7, %s228_s7 }
  0x5d   : > { %p874_p10 = scmp.ne.s32.totalorder %s228_s7, %s873_s8  ;;  %p882_p0 = scmp.lt.s32.totalorder %s873_s8, %s873_s8 }
  0x5f   : > { %p876_p11 = pnand %p874_p10, %p1117_p8  ;;  %p883_p2 = por %p882_p0, %p881_p13 }
  0x61   : > { %p877_p12 = pneg %p876_p11 }
  0x63   : > { %p884_p5 = pnand %p883_p2, %p877_p12 }
  0x65   : > { %887 = shalt.err (!%p884_p5)
}
  0x66   : > { %696 = dma.hbm_to_vmem [thread:$0]  (!%p1101_p6), %s1357_s4, 512, %s228_s7, [#allocation9], %s1013_s16, %s1013_s16, %s1014_s17  }
  0x67   : > { %s632_s6 = sadd.s32 4294967294, %s1008_s23   ;;  %s35_s14 = sadd.s32 1, %s1004_s22 }
  0x68   : > { %p37_p8 = scmp.ge.s32.totalorder %s35_s14, 2  ;;  %s44_s29 = sadd.s32 1, %s996_s20 }
  0x69   : > { %p51_p7 = scmp.ne.s32.totalorder %s996_s20, %s992_s19  ;;  %p52_p9 = scmp.eq.s32.totalorder %s1008_s23, 0 }
  0x6a   : > { %s1384_s14 = smov (%p37_p8, %s35_s14), 0  ;;  %p57_p1 = scmp.ne.s32.totalorder %s992_s19, %s988_s18 }
  0x6b   : > { %p1207_p4 = por %p52_p9, %p51_p7  ;;  %s39_s16 = ssub.s32 %s1004_s22, %s1384_s14 }
  0x6c   : > { %p167_p6 = scmp.eq.s32.totalorder %s631_s24, 1  ;;  %p42_p3 = scmp.eq.s32.totalorder %s39_s16, 0 }
  0x6d   : > { %p1368_p10 = scmp.ne.s32.totalorder %s1363_s25, 0  ;;  %p173_p13 = scmp.eq.s32.totalorder %s632_s6, 1 }
  0x6e   : > { %p1223_p12 = por %p167_p6, %p51_p7  ;;  %p709_p2 = scmp.lt.s32.totalorder %s1008_s23, 2 }
  0x6f   : > { %p1219_p11 = por %p1368_p10, %p57_p1  ;;  %p1230_p0 = por %p173_p13, %p57_p1 }
  0x70   : > { %s1370_s7 = scalar_select %p1223_p12, 1, 0 }
  0x71   : > { %s1228_s10 = scalar_select %p42_p3, %s996_s20, %s44_s29  }
  0x72   : > { %s1371_s11 = scalar_select %p1230_p0, 1, 0 }
  0x73   : > { %s241_s12 = sand.u32 1, %s996_s20   ;;  %s660_s24 = sshll.u32 %s1004_s22, 7 }
  0x74   : > { %s639_s13 = sshll.u32 %s241_s12, 3  ;;  %s1240_s8 = scalar_lea.hbm %s1353_s0, %s660_s24 }
  0x75   : > { %s245_s30 = scalar_lea.vmem [#allocation2], %s639_s13  ;;  %p1244_p5 = pnand %p709_p2, %p1207_p4 }
  0x76   : > { %s255_s27 = sshll.u32 %s245_s30, 4  ;;  %s242_s29 = scalar_lea.sflag [#allocation3], %s241_s12  ;;  %s1248_s27 = int_to_ptr.vmem [resolvable:$true] %s255_s27 }
  0x77   : > { %s888_s16 = scalar_lea.hbm %s1240_s8, 128  ;;  %p890_p7 = pneg %p1244_p5 }
  0x78   : > { %p889_p8 = scmp.ne.s32.totalorder %s1240_s8, %s888_s16  ;;  %s893_s9 = scalar_lea.hbm %s1353_s0, 256 }
  0x79   : > { %p894_p4 = scmp.lt.u32.totalorder %s1240_s8, %s1353_s0  ;;  %p895_p6 = scmp.lt.u32.totalorder %s893_s9, %s888_s16 }
  0x7a   : > { %p891_p9 = pnand %p890_p7, %p889_p8  ;;  %p897_p10 = scmp.lt.u32.totalorder %s888_s16, %s1240_s8 }
  0x7b   : > { %p896_p3 = por %p895_p6, %p894_p4 }
  0x7c   : > { %p892_p1 = pneg %p891_p9 }
  0x7d   : > { %p898_p13 = por %p897_p10, %p896_p3 }
  0x7f   : > { %p899_p2 = pnand %p898_p13, %p892_p1 }
  0x81   : > { %902 = shalt.err (!%p899_p2)
}
  0x82   : > { %s903_s12 = scalar_lea.vmem %s1248_s27, 128  ;;  %s1016_s30 = smov [#allocation2]  }
  0x83   : > { %p904_p8 = scmp.ne.s32.totalorder %s1248_s27, %s903_s12  ;;  %s908_s24 = sshll.u32 %s1016_s30, 4  ;;  %s909_s24 = int_to_ptr.vmem [resolvable:$false] %s908_s24 }
  0x84   : > { %s910_s13 = scalar_lea.vmem %s909_s24, 256  ;;  %p911_p12 = scmp.lt.s32.totalorder %s1248_s27, %s909_s24 }
  0x85   : > { %p906_p9 = pnand %p904_p8, %p890_p7  ;;  %p912_p4 = scmp.lt.s32.totalorder %s910_s13, %s903_s12 }
  0x87   : > { %p907_p0 = pneg %p906_p9  ;;  %p913_p6 = por %p912_p4, %p911_p12 }
  0x89   : > { %p914_p3 = pnand %p913_p6, %p907_p0 }
  0x8b   : > { %917 = shalt.err (!%p914_p3)
}
  0x8c   : > { %700 = dma.hbm_to_vmem [thread:$0]  (!%p1244_p5), %s1240_s8, 128, %s1248_s27, %s242_s29  }
  0x8d   : > { %p1373_p1 = scmp.ne.s32.totalorder %s1364_s26, 0 }
  0x8e   : > { %s1278_s16 = sand.u32 (!%p1373_p1), 1, %s992_s19  }
  0x8f   : > { %264 = sbr.rel (%p1373_p1) target bundleno = 534 (0x216), region = 40  ;;  %s643_s9 = sshll.u32 (!%p1373_p1), %s1278_s16, 3 }
  0x90   : > { %s267_s15 = scalar_lea.sflag (!%p1373_p1), [#allocation3], %s1278_s16  ;;  %s1282_s28 = scalar_lea.vmem (!%p1373_p1), [#allocation2], %s643_s9 }
  0x96   : > { %971 = dma.done.wait (%p1219_p11), %s267_s15, 128  }
  0x97   : > { %973 = vsyncadd (%p1219_p11), %s267_s15, 4294967168  ;;  %p1374_p12 = scmp.ne.s32.totalorder %s1363_s25, 0 }
  0x99   : > { %975 = dma.done.wait (%p1374_p12), [#allocation6], 128  }
  0x9a   : > { %977 = vsyncadd (%p1374_p12), [#allocation6], 4294967168 }
  0x9b   : > { %979 = dma.done.wait (%p1374_p12), [#allocation9], 1024  }
  0x9c   : > { %981 = vsyncadd (%p1374_p12), [#allocation9], 4294966272  ;;  %v1017_v0 = vmov 0   ;;  %v316_v1 = vld [vmem:[#allocation5] sm:$0xf]  ;;  %v351_v3 = vld [vmem:[#allocation10 + $0x10] sm:$0xff]  ;;  %v324_v10 = vlaneseq }
  0x9d   : > { %774 = vset.pattern.permute.xlu0 %v1017_v0  ;;  %775 = vset.pattern.permute.xlu1 %v1017_v0  ;;  %v330_v2 = vld [vmem:[#allocation7] sm:$0xf]  ;;  %v1018_v4 = vmov 0.0   ;;  %v349_v5 = vld [vmem:[#allocation10] sm:$0xff]  ;;  %v350_v6 = vld [vmem:[#allocation10 + $0x8] sm:$0xff]  ;;  %vm388_vm0 = vcmask 1043456  }
  0x9e   : > { %319 = vperm.xlu0 %774, %v316_v1   ;;  %457 = vmatprep.mubr.f32.mxu0 %v1018_v4  ;;  %v352_v7 = vld [vmem:[#allocation10 + $0x18] sm:$0xff]  ;;  %v1019_v8 = vmov 839922192   ;;  %v325_v12 = vshrl.u32 %v324_v10, 7  ;;  %v315_v16 = vld [vmem:[%s1282_s28] sm:$0xff]  ;;  %v345_v23 = vld [vmem:[#allocation8] sm:$0xff] }
  0x9f   : > { %469 = vmatprep.mubr.f32.mxu1 %v1018_v4  ;;  %355 = vperm.xlu1 %775, %v349_v5   ;;  %v322_v9 = vunpack.c.l.s4 %v1019_v8  ;;  %vm375_vm1 = vcmask 31744   ;;  %v347_v24 = vld [vmem:[#allocation8 + $0x10] sm:$0xff]  ;;  %v346_v25 = vld [vmem:[#allocation8 + $0x8] sm:$0xff]  ;;  %v348_v26 = vld [vmem:[#allocation8 + $0x18] sm:$0xff]  ;;  %s648_s25 = sshll.u32 %s1278_s16, 6  ;;  %s661_s8 = sshll.u32 %s1000_s21, 10 }
  0xa0   : > { %s312_s26 = scalar_lea.vmem [#allocation11], %s648_s25  ;;  %s1304_s21 = scalar_lea.hbm %s1358_s5, %s661_s8 }
  0xa1   : > { %v323_v11 = vunpack.c.0.s8 %v322_v9  ;;  %s506_s17 = sshll.u32 %s312_s26, 4  ;;  %s491_s29 = scalar_lea.sflag [#allocation4], %s1278_s16  ;;  %s1299_s17 = int_to_ptr.vmem [resolvable:$true] %s506_s17 }
  0xa2   : > { %333 = vperm.xlu0 %774, %v330_v2   ;;  %s918_s12 = scalar_lea.vmem %s1299_s17, 1024  ;;  %p1375_p0 = scmp.ne.s32.totalorder %s1370_s7, 0 }
  0xa3   : > { %360 = vperm.xlu1 %775, %v350_v6   ;;  %v326_v13 = vsub.s32 %v323_v11, %v325_v12  ;;  %p919_p11 = scmp.ne.s32.totalorder %s1299_s17, %s918_s12  ;;  %s1020_s30 = smov [#allocation11]  }
  0xa4   : > { %s922_s24 = sshll.u32 %s1020_s30, 4  ;;  %s923_s24 = int_to_ptr.vmem [resolvable:$false] %s922_s24 }
  0xa5   : > { %p920_p5 = pnand %p919_p11, %p1375_p0  ;;  %s924_s13 = scalar_lea.vmem %s923_s24, 2048 }
  0xa6   : > { %365 = vperm.xlu0 %774, %v351_v3   ;;  %p925_p10 = scmp.lt.s32.totalorder %s1299_s17, %s923_s24  ;;  %p926_p13 = scmp.lt.s32.totalorder %s924_s13, %s918_s12 }
  0xa7   : > { %370 = vperm.xlu1 %775, %v352_v7   ;;  %p921_p7 = pneg %p920_p5 }
  0xa8   : > { %p927_p2 = por %p926_p13, %p925_p10 }
  0xaa   : > { %p928_p8 = pnand %p927_p2, %p921_p7 }
 0x11d   : > { %v320_v14 = vpop.permute.xlu0 %319 }
 0x11e   : > { %v327_v15 = vrot.slane %v320_v14, %v326_v13  ;;  %v356_v27 = vpop.permute.xlu1 %355 }
 0x120   : > { %v329_v18 = vmul.f32 %v327_v15, %v315_v16 }
 0x121   : > { %v334_v17 = vpop.permute.xlu0 %333 }
 0x122   : > { %v341_v19 = vrot.slane %v334_v17, %v326_v13  ;;  %v361_v28 = vpop.permute.xlu1 %360 }
 0x124   : > { %v343_v20 = vadd.f32 %v341_v19, %v329_v18 }
 0x125   : > { %v366_v29 = vpop.permute.xlu0 %365 }
 0x126   : > { %v344_v21 = vmax.f32 %v343_v20, 0.0  ;;  %v371_v38 = vpop.permute.xlu1 %370 }
 0x128   : > { %v374_v22 = vcombine.high %v344_v21, %v344_v21 }
 0x12a   : > { %649 = vmatprep.subr.msk.mxu0 %vm388_vm0, %v374_v22  ;;  %662 = vmatprep.subr.msk.mxu1 %vm388_vm0, %v374_v22 }
 0x12b   : > { %650 = vmatpush1.msk.msra.mxu0 %vm388_vm0, %v344_v21  ;;  %663 = vmatpush1.msk.msra.mxu1 %vm388_vm0, %v344_v21 }
 0x12c   : > { %651 = vmatmul.mubr.msk.f32.vlgmr.msra.gmra.mrb[0].mxu0 %vm375_vm1, %v345_v23  ;;  %653 = vmatmul.mubr.msk.f32.vlgmr.msra.gmra.mrb[0].mxu1 %vm375_vm1, %v347_v24 }
 0x12d   : > { %463 = vmatprep.mubr.f32.mxu0 %v1018_v4  ;;  %475 = vmatprep.mubr.f32.mxu1 %v1018_v4 }
 0x130   : > { %652 = vmatmul.mubr.msk.f32.gmra.mrb[2].mxu0 %vm375_vm1, %v346_v25  ;;  %654 = vmatmul.mubr.msk.f32.gmra.mrb[2].mxu1 %vm375_vm1, %v348_v26 }
 0x1ff   : > { %v459_v30 = vpop.f32.mrb[0].mxu0  ;;  %v471_v31 = vpop.f32.mrb[0].mxu1 }
 0x200   : > { %v460_v32 = vadd.f32 %v459_v30, %v356_v27  ;;  %v472_v33 = vadd.f32 %v471_v31, %v366_v29  ;;  %v461_v34 = vpop.f32.mrb[1].mxu0  ;;  %v473_v35 = vpop.f32.mrb[1].mxu1 }
 0x201   : > { %v462_v36 = vadd.f32 %v461_v34, %v356_v27  ;;  %v474_v37 = vadd.f32 %v473_v35, %v366_v29 }
 0x202   : > { %482 = vst [vmem:[%s312_s26] sm:$0xff] %v460_v32  ;;  %486 = vst [vmem:[%s312_s26 + $0x20] sm:$0xff] %v472_v33 }
 0x203   : > { %483 = vst [vmem:[%s312_s26 + $0x8] sm:$0xff] %v462_v36  ;;  %487 = vst [vmem:[%s312_s26 + $0x28] sm:$0xff] %v474_v37  ;;  %v465_v39 = vpop.f32.mrb[2].mxu0  ;;  %v477_v40 = vpop.f32.mrb[2].mxu1 }
 0x204   : > { %v466_v41 = vadd.f32 %v465_v39, %v361_v28  ;;  %v478_v42 = vadd.f32 %v477_v40, %v371_v38  ;;  %v467_v43 = vpop.f32.mrb[3].mxu0  ;;  %v479_v44 = vpop.f32.mrb[3].mxu1 }
 0x205   : > { %v468_v45 = vadd.f32 %v467_v43, %v361_v28  ;;  %v480_v46 = vadd.f32 %v479_v44, %v371_v38 }
 0x206   : > { %484 = vst [vmem:[%s312_s26 + $0x10] sm:$0xff] %v466_v41  ;;  %488 = vst [vmem:[%s312_s26 + $0x30] sm:$0xff] %v478_v42 }
 0x207   : > { %485 = vst [vmem:[%s312_s26 + $0x18] sm:$0xff] %v468_v45  ;;  %489 = vst [vmem:[%s312_s26 + $0x38] sm:$0xff] %v480_v46 }
 0x208   : > { %931 = shalt.err (!%p928_p8)
}
 0x209   : > { %s932_s9 = scalar_lea.hbm %s1304_s21, 1024  ;;  %s936_s25 = scalar_lea.hbm %s1358_s5, 2048 }
 0x20a   : > { %p933_p9 = scmp.ne.s32.totalorder %s1304_s21, %s932_s9  ;;  %p937_p3 = scmp.lt.u32.totalorder %s1304_s21, %s1358_s5 }
 0x20b   : > { %p938_p1 = scmp.lt.u32.totalorder %s936_s25, %s932_s9  ;;  %p940_p11 = scmp.lt.u32.totalorder %s932_s9, %s1304_s21 }
 0x20c   : > { %p934_p4 = pnand %p933_p9, %p1375_p0 }
 0x20d   : > { %p939_p12 = por %p938_p1, %p937_p3 }
 0x20e   : > { %p935_p6 = pneg %p934_p4 }
 0x20f   : > { %p941_p5 = por %p940_p11, %p939_p12 }
 0x211   : > { %p942_p7 = pnand %p941_p5, %p935_p6 }
 0x213   : > { %945 = shalt.err (!%p942_p7)
}
 0x214   : > { %s1021_s27 = smov 256   ;;  %s1022_s6 = smov 16  }
 0x215   : > { %682 = dma.vmem_to_hbm [thread:$0]  (%p1375_p0), %s1299_s17, 1024, %s1304_s21, %s491_s29, %s1021_s27, %s1021_s27, %s1022_s6  }
 0x216 PF: > { %s521_s12 = sand.u32 1, %s988_s18   ;;  %p1376_p10 = scmp.ne.s32.totalorder %s1371_s11, 0 }
 0x217   : > { %p1377_p13 = scmp.ge.s32.totalorder %s1008_s23, 2  ;;  %s522_s30 = scalar_lea.sflag [#allocation4], %s521_s12 }
 0x219   : > { %p702_p2 = pnand %p1377_p13, %p1376_p10 }
 0x21b   : > { %983 = dma.done.wait (!%p702_p2), %s522_s30, 1024  }
 0x21c   : > { %985 = vsyncadd (!%p702_p2), %s522_s30, 4294966272  ;;  %s23_s23 = sadd.s32 1, %s1008_s23   ;;  %s1378_s18 = smov %s992_s19 }
 0x21d   : > { %p20_p8 = scmp.ge.s32.totalorder %s23_s23, 4   ;;  %s1379_s19 = smov %s996_s20 }
 0x21e   : > { %s1380_s20 = smov %s1228_s10  ;;  %s1381_s21 = smov %s1004_s22 }
 0x21f   : > { %s1382_s22 = smov %s1384_s14  ;;  %22 = sbr.rel (!%p20_p8) target bundleno = 8 (0x8), region = 101 }
 0x226   :  { %527 = vsyncpa [#allocation3], 1 }
 0x227   :  { %529 = vsyncpa [#allocation3 + $0x1], 1 }
 0x228   :  { %530 = vsyncpa [#allocation6], 1 }
 0x229   :  { %531 = vsyncpa [#allocation9], 1 }
 0x22a   :  { %532 = vsyncpa [#allocation4], 1 }
 0x22b   :  { %534 = vsyncpa [#allocation4 + $0x1], 1 }

</bundles_post_ra>
